<compile_context>
chip_gen: v7x
topology: tpu7x:2x2x1
jax: 0.10.0
libtpu: 0.0.40
codegen_flags: <defaults>
</compile_context>

<pallas_src>
import jax
import jax.numpy as jnp
from jax.experimental import pallas as pl
from jax.experimental.pallas import tpu as pltpu


def _round_up(n, m):
    return ((n + m - 1) // m) * m


# --------------------- fused conv(K) -> maxpool(2) -> relu -------------------

def _conv_pool_relu_kernel(w_ref, b_ref, p00_ref, p01_ref, p10_ref, p11_ref, o_ref):
    # One MXU GEMM per 2x2 pool-window position, then max / +bias / relu (VPU
    # epilogue, free under MXU slack).  Output lane dim = B*Ho*Wo (dense stores).
    w = w_ref[...]
    y00 = jnp.dot(w, p00_ref[...], preferred_element_type=jnp.float32)
    y01 = jnp.dot(w, p01_ref[...], preferred_element_type=jnp.float32)
    y10 = jnp.dot(w, p10_ref[...], preferred_element_type=jnp.float32)
    y11 = jnp.dot(w, p11_ref[...], preferred_element_type=jnp.float32)
    y = jnp.maximum(jnp.maximum(y00, y01), jnp.maximum(y10, y11))
    y = jnp.maximum(y + b_ref[...], 0.0)          # bias constant across window
    o_ref[...] = y.astype(o_ref.dtype)


def conv_pool_relu(xc, w_mat, b_col, K, *, tm_max=512):
    """VALID conv(K) -> max_pool2d(2) -> ReLU, fused.

    xc:    [Cin, B, H, W] channel-major activations (any float dtype)
    w_mat: [Cout, Cin*K*K] bf16   (torch weight.reshape(Cout, -1))
    b_col: [Cout, 1] f32
    returns [Cout, B, Ho, Wo] bf16 (channel-major).
    """
    Cin, B, H, W = xc.shape
    OH, OW = H - K + 1, W - K + 1
    Ho, Wo = OH // 2, OW // 2
    Cout, Ck = w_mat.shape
    M = B * Ho * Wo
    TM = min(tm_max, _round_up(M, 128))   # lane-dense tile, multiple of 128
    Mpad = _round_up(M, TM)               # pad so the grid divides exactly

    def patches(pi, pj):
        # stride-2 im2col for pool-window offset (pi, pj): [Cin*K*K, B*Ho*Wo]
        # row order ci*K*K + di*K + dj matches torch weight.reshape(Cout, -1).
        slabs = []
        for di in range(K):
            for dj in range(K):
                slabs.append(xc[:, :, di + pi: di + pi + 2 * Ho: 2,
                                      dj + pj: dj + pj + 2 * Wo: 2])  # [Cin,B,Ho,Wo]
        p = jnp.stack(slabs, axis=1)                      # [Cin, K*K, B, Ho, Wo]
        p = p.reshape(Cin * K * K, M).astype(jnp.bfloat16)
        if Mpad != M:
            p = jnp.pad(p, ((0, 0), (0, Mpad - M)))
        return p

    p00, p01, p10, p11 = patches(0, 0), patches(0, 1), patches(1, 0), patches(1, 1)

    out = pl.pallas_call(
        _conv_pool_relu_kernel,
        out_shape=jax.ShapeDtypeStruct((Cout, Mpad), jnp.bfloat16),
        grid=(Mpad // TM,),
        in_specs=[pl.BlockSpec((Cout, Ck), lambda i: (0, 0)),   # weights resident
                  pl.BlockSpec((Cout, 1), lambda i: (0, 0)),    # bias resident
                  pl.BlockSpec((Ck, TM), lambda i: (0, i)),
                  pl.BlockSpec((Ck, TM), lambda i: (0, i)),
                  pl.BlockSpec((Ck, TM), lambda i: (0, i)),
                  pl.BlockSpec((Ck, TM), lambda i: (0, i))],
        out_specs=pl.BlockSpec((Cout, TM), lambda i: (0, i)),
        compiler_params=pltpu.CompilerParams(dimension_semantics=("parallel",)),
    )(w_mat, b_col, p00, p01, p10, p11)

    return out[:, :M].reshape(Cout, B, Ho, Wo)


# ------------------- fused fc1 -> relu -> fc2 -> log_softmax -----------------

def _mlp_head_kernel(x_ref, w1_ref, b1_ref, w2_ref, b2_ref, o_ref):
    h = jnp.dot(x_ref[...], w1_ref[...], preferred_element_type=jnp.float32) + b1_ref[...]
    h = jnp.maximum(h, 0.0).astype(jnp.bfloat16)
    y = jnp.dot(h, w2_ref[...], preferred_element_type=jnp.float32) + b2_ref[...]
    m = jnp.max(y, axis=1, keepdims=True)
    z = y - m
    lse = jnp.log(jnp.sum(jnp.exp(z), axis=1, keepdims=True))
    o_ref[...] = z - lse


def mlp_head(x, w1, b1, w2, b2):
    B, K1 = x.shape
    H = w1.shape[1]
    O = w2.shape[1]
    return pl.pallas_call(
        _mlp_head_kernel,
        out_shape=jax.ShapeDtypeStruct((B, O), jnp.float32),
        grid=(1,),
        in_specs=[pl.BlockSpec((B, K1), lambda i: (0, 0)),
                  pl.BlockSpec((K1, H), lambda i: (0, 0)),
                  pl.BlockSpec((1, H), lambda i: (0, 0)),
                  pl.BlockSpec((H, O), lambda i: (0, 0)),
                  pl.BlockSpec((1, O), lambda i: (0, 0))],
        out_specs=pl.BlockSpec((B, O), lambda i: (0, 0)),
        compiler_params=pltpu.CompilerParams(dimension_semantics=("arbitrary",)),
    )(x, w1, b1, w2, b2)


# --------------------------------- forward -----------------------------------

def my_network_forward(x, kp):
    # x: [B, 1, 28, 28] NCHW (MNIST-sized so flatten yields 320)
    B = x.shape[0]
    xc = x.transpose(1, 0, 2, 3)                                    # [1, B, 28, 28]
    a1 = conv_pool_relu(xc, kp["conv1_wm"], kp["conv1_bc"], K=5)    # [10, B, 12, 12]
    # TODO(synk): Dropout2d is identity in eval mode; training-time channel dropout not implemented.
    a2 = conv_pool_relu(a1, kp["conv2_wm"], kp["conv2_bc"], K=5)    # [20, B, 4, 4]
    flat = a2.transpose(1, 0, 2, 3).reshape(B, 320)                 # == torch .view(-1, 320)
    return mlp_head(flat, kp["fc1_wT"], kp["fc1_b"], kp["fc2_wT"], kp["fc2_b"])


# --------------------------------- params ------------------------------------

def init_params(key):
    # torch-layout parameters (as nn.Conv2d / nn.Linear would hold them)
    ks = jax.random.split(key, 8)

    def uinit(k, shape, fan_in):
        bound = 1.0 / jnp.sqrt(jnp.float32(fan_in))
        return jax.random.uniform(k, shape, jnp.float32, -bound, bound)

    return {
        "conv1_w": uinit(ks[0], (10, 1, 5, 5), 1 * 5 * 5),
        "conv1_b": uinit(ks[1], (10,), 1 * 5 * 5),
        "conv2_w": uinit(ks[2], (20, 10, 5, 5), 10 * 5 * 5),
        "conv2_b": uinit(ks[3], (20,), 10 * 5 * 5),
        "fc1_w":   uinit(ks[4], (50, 320), 320),   # torch Linear layout [out, in]
        "fc1_b":   uinit(ks[5], (50,), 320),
        "fc2_w":   uinit(ks[6], (10, 50), 50),
        "fc2_b":   uinit(ks[7], (10,), 50),
    }


def prepare_params(p):
    # One-time layout/dtype prep: reshape conv weights to GEMM form, pre-transpose
    # fc weights to [in, out], cast GEMM operands to bf16 (f32 accumulation in-kernel).
    return {
        "conv1_wm": p["conv1_w"].reshape(10, 25).astype(jnp.bfloat16),
        "conv1_bc": p["conv1_b"].reshape(10, 1).astype(jnp.float32),
        "conv2_wm": p["conv2_w"].reshape(20, 250).astype(jnp.bfloat16),
        "conv2_bc": p["conv2_b"].reshape(20, 1).astype(jnp.float32),
        "fc1_wT":   p["fc1_w"].T.astype(jnp.bfloat16),     # [320, 50]
        "fc1_b":    p["fc1_b"].reshape(1, 50).astype(jnp.float32),
        "fc2_wT":   p["fc2_w"].T.astype(jnp.bfloat16),     # [50, 10]
        "fc2_b":    p["fc2_b"].reshape(1, 10).astype(jnp.float32),
    }


if __name__ == "__main__":
    key = jax.random.PRNGKey(0)
    pkey, xkey = jax.random.split(key)
    params = init_params(pkey)
    kparams = prepare_params(params)
    x = jax.random.normal(xkey, (2, 1, 28, 28), dtype=jnp.float32)

    fwd = jax.jit(my_network_forward)
    out = jax.block_until_ready(fwd(x, kparams))
    assert out.shape == (2, 10), out.shape
    # log_softmax rows must exp-sum to 1
    assert bool(jnp.allclose(jnp.exp(out).sum(axis=1), 1.0, atol=1e-4))
    print("KERNEL_OK")
</pallas_src>

<mosaic_0001>
module attributes {stable_mosaic.version = 11 : i64} {
  func.func @_conv_pool_relu_kernel(%arg0: i32, %arg1: memref<10x25xbf16, #tpu.memory_space<vmem>>, %arg2: memref<10x1xf32, #tpu.memory_space<vmem>>, %arg3: memref<25x384xbf16, #tpu.memory_space<vmem>>, %arg4: memref<25x384xbf16, #tpu.memory_space<vmem>>, %arg5: memref<25x384xbf16, #tpu.memory_space<vmem>>, %arg6: memref<25x384xbf16, #tpu.memory_space<vmem>>, %arg7: memref<10x384xbf16, #tpu.memory_space<vmem>>) attributes {dimension_semantics = [#tpu.dimension_semantics<parallel>], iteration_bounds = array<i64: 1>, scalar_prefetch = 0 : i64, scratch_operands = 0 : i64, tpu.core_type = #tpu.core_type<tc>, window_params = [{pipeline_mode = #tpu.pipeline_mode<synchronous>, transform_indices = @transform_0, window_bounds = array<i64: 10, 25>}, {pipeline_mode = #tpu.pipeline_mode<synchronous>, transform_indices = @transform_1, window_bounds = array<i64: 10, 1>}, {transform_indices = @transform_2, window_bounds = array<i64: 25, 384>}, {transform_indices = @transform_3, window_bounds = array<i64: 25, 384>}, {transform_indices = @transform_4, window_bounds = array<i64: 25, 384>}, {transform_indices = @transform_5, window_bounds = array<i64: 25, 384>}, {transform_indices = @transform_6, window_bounds = array<i64: 10, 384>}]} {
    %c0 = arith.constant 0 : index
    %c0_0 = arith.constant 0 : index
    %0 = vector.load %arg1[%c0, %c0_0] : memref<10x25xbf16, #tpu.memory_space<vmem>>, vector<10x25xbf16>
    %c0_1 = arith.constant 0 : index
    %c0_2 = arith.constant 0 : index
    %1 = vector.load %arg3[%c0_1, %c0_2] : memref<25x384xbf16, #tpu.memory_space<vmem>>, vector<25x384xbf16>
    %cst = arith.constant dense<0.000000e+00> : vector<10x384xf32>
    %2 = tpu.matmul %0, %1, %cst {dimension_numbers = #tpu.dot_dimension_numbers<[1], [0], [0], [1], [0, 0, 1, 1], [], []>} : vector<10x25xbf16>, vector<25x384xbf16>, vector<10x384xf32> -> vector<10x384xf32>
    %c0_3 = arith.constant 0 : index
    %c0_4 = arith.constant 0 : index
    %3 = vector.load %arg4[%c0_3, %c0_4] : memref<25x384xbf16, #tpu.memory_space<vmem>>, vector<25x384xbf16>
    %cst_5 = arith.constant dense<0.000000e+00> : vector<10x384xf32>
    %4 = tpu.matmul %0, %3, %cst_5 {dimension_numbers = #tpu.dot_dimension_numbers<[1], [0], [0], [1], [0, 0, 1, 1], [], []>} : vector<10x25xbf16>, vector<25x384xbf16>, vector<10x384xf32> -> vector<10x384xf32>
    %c0_6 = arith.constant 0 : index
    %c0_7 = arith.constant 0 : index
    %5 = vector.load %arg5[%c0_6, %c0_7] : memref<25x384xbf16, #tpu.memory_space<vmem>>, vector<25x384xbf16>
    %cst_8 = arith.constant dense<0.000000e+00> : vector<10x384xf32>
    %6 = tpu.matmul %0, %5, %cst_8 {dimension_numbers = #tpu.dot_dimension_numbers<[1], [0], [0], [1], [0, 0, 1, 1], [], []>} : vector<10x25xbf16>, vector<25x384xbf16>, vector<10x384xf32> -> vector<10x384xf32>
    %c0_9 = arith.constant 0 : index
    %c0_10 = arith.constant 0 : index
    %7 = vector.load %arg6[%c0_9, %c0_10] : memref<25x384xbf16, #tpu.memory_space<vmem>>, vector<25x384xbf16>
    %cst_11 = arith.constant dense<0.000000e+00> : vector<10x384xf32>
    %8 = tpu.matmul %0, %7, %cst_11 {dimension_numbers = #tpu.dot_dimension_numbers<[1], [0], [0], [1], [0, 0, 1, 1], [], []>} : vector<10x25xbf16>, vector<25x384xbf16>, vector<10x384xf32> -> vector<10x384xf32>
    %9 = arith.maximumf %2, %4 : vector<10x384xf32>
    %10 = arith.maximumf %6, %8 : vector<10x384xf32>
    %11 = arith.maximumf %9, %10 : vector<10x384xf32>
    %c0_12 = arith.constant 0 : index
    %c0_13 = arith.constant 0 : index
    %12 = vector.load %arg2[%c0_12, %c0_13] : memref<10x1xf32, #tpu.memory_space<vmem>>, vector<10x1xf32>
    %13 = vector.broadcast %12 : vector<10x1xf32> to vector<10x384xf32>
    %14 = arith.addf %11, %13 : vector<10x384xf32>
    %cst_14 = arith.constant 0.000000e+00 : f32
    %15 = vector.broadcast %cst_14 : f32 to vector<10x384xf32>
    %16 = arith.maximumf %14, %15 : vector<10x384xf32>
    %17 = arith.truncf %16 : vector<10x384xf32> to vector<10x384xbf16>
    %c0_15 = arith.constant 0 : index
    %c0_16 = arith.constant 0 : index
    %18 = vector.load %arg7[%c0_15, %c0_16] : memref<10x384xbf16, #tpu.memory_space<vmem>>, vector<10x384xbf16>
    tpu.vector_store %arg7[%c0_15, %c0_16], %17 {strides = array<i32>} : memref<10x384xbf16, #tpu.memory_space<vmem>>, vector<10x384xbf16>,
    return
  }
  func.func @transform_0(%arg0: i32) -> (i32, i32) {
    %c0_i32 = arith.constant 0 : i32
    %c0_i32_0 = arith.constant 0 : i32
    %c0_i32_1 = arith.constant 0 : i32
    return %c0_i32, %c0_i32_0 : i32, i32
  }
  func.func @transform_1(%arg0: i32) -> (i32, i32) {
    %c0_i32 = arith.constant 0 : i32
    %c0_i32_0 = arith.constant 0 : i32
    %c0_i32_1 = arith.constant 0 : i32
    return %c0_i32, %c0_i32_0 : i32, i32
  }
  func.func @transform_2(%arg0: i32) -> (i32, i32) {
    %c0_i32 = arith.constant 0 : i32
    %c0_i32_0 = arith.constant 0 : i32
    return %c0_i32, %arg0 : i32, i32
  }
  func.func @transform_3(%arg0: i32) -> (i32, i32) {
    %c0_i32 = arith.constant 0 : i32
    %c0_i32_0 = arith.constant 0 : i32
    return %c0_i32, %arg0 : i32, i32
  }
  func.func @transform_4(%arg0: i32) -> (i32, i32) {
    %c0_i32 = arith.constant 0 : i32
    %c0_i32_0 = arith.constant 0 : i32
    return %c0_i32, %arg0 : i32, i32
  }
  func.func @transform_5(%arg0: i32) -> (i32, i32) {
    %c0_i32 = arith.constant 0 : i32
    %c0_i32_0 = arith.constant 0 : i32
    return %c0_i32, %arg0 : i32, i32
  }
  func.func @transform_6(%arg0: i32) -> (i32, i32) {
    %c0_i32 = arith.constant 0 : i32
    %c0_i32_0 = arith.constant 0 : i32
    return %c0_i32, %arg0 : i32, i32
  }
}

module attributes {stable_mosaic.version = 11 : i64} {
  func.func @_conv_pool_relu_kernel(%arg0: i32, %arg1: memref<20x250xbf16, #tpu.memory_space<vmem>>, %arg2: memref<20x1xf32, #tpu.memory_space<vmem>>, %arg3: memref<250x128xbf16, #tpu.memory_space<vmem>>, %arg4: memref<250x128xbf16, #tpu.memory_space<vmem>>, %arg5: memref<250x128xbf16, #tpu.memory_space<vmem>>, %arg6: memref<250x128xbf16, #tpu.memory_space<vmem>>, %arg7: memref<20x128xbf16, #tpu.memory_space<vmem>>) attributes {dimension_semantics = [#tpu.dimension_semantics<parallel>], iteration_bounds = array<i64: 1>, scalar_prefetch = 0 : i64, scratch_operands = 0 : i64, tpu.core_type = #tpu.core_type<tc>, window_params = [{pipeline_mode = #tpu.pipeline_mode<synchronous>, transform_indices = @transform_0, window_bounds = array<i64: 20, 250>}, {pipeline_mode = #tpu.pipeline_mode<synchronous>, transform_indices = @transform_1, window_bounds = array<i64: 20, 1>}, {transform_indices = @transform_2, window_bounds = array<i64: 250, 128>}, {transform_indices = @transform_3, window_bounds = array<i64: 250, 128>}, {transform_indices = @transform_4, window_bounds = array<i64: 250, 128>}, {transform_indices = @transform_5, window_bounds = array<i64: 250, 128>}, {transform_indices = @transform_6, window_bounds = array<i64: 20, 128>}]} {
    %c0 = arith.constant 0 : index
    %c0_0 = arith.constant 0 : index
    %0 = vector.load %arg1[%c0, %c0_0] : memref<20x250xbf16, #tpu.memory_space<vmem>>, vector<20x250xbf16>
    %c0_1 = arith.constant 0 : index
    %c0_2 = arith.constant 0 : index
    %1 = vector.load %arg3[%c0_1, %c0_2] : memref<250x128xbf16, #tpu.memory_space<vmem>>, vector<250x128xbf16>
    %cst = arith.constant dense<0.000000e+00> : vector<20x128xf32>
    %2 = tpu.matmul %0, %1, %cst {dimension_numbers = #tpu.dot_dimension_numbers<[1], [0], [0], [1], [0, 0, 1, 1], [], []>} : vector<20x250xbf16>, vector<250x128xbf16>, vector<20x128xf32> -> vector<20x128xf32>
    %c0_3 = arith.constant 0 : index
    %c0_4 = arith.constant 0 : index
    %3 = vector.load %arg4[%c0_3, %c0_4] : memref<250x128xbf16, #tpu.memory_space<vmem>>, vector<250x128xbf16>
    %cst_5 = arith.constant dense<0.000000e+00> : vector<20x128xf32>
    %4 = tpu.matmul %0, %3, %cst_5 {dimension_numbers = #tpu.dot_dimension_numbers<[1], [0], [0], [1], [0, 0, 1, 1], [], []>} : vector<20x250xbf16>, vector<250x128xbf16>, vector<20x128xf32> -> vector<20x128xf32>
    %c0_6 = arith.constant 0 : index
    %c0_7 = arith.constant 0 : index
    %5 = vector.load %arg5[%c0_6, %c0_7] : memref<250x128xbf16, #tpu.memory_space<vmem>>, vector<250x128xbf16>
    %cst_8 = arith.constant dense<0.000000e+00> : vector<20x128xf32>
    %6 = tpu.matmul %0, %5, %cst_8 {dimension_numbers = #tpu.dot_dimension_numbers<[1], [0], [0], [1], [0, 0, 1, 1], [], []>} : vector<20x250xbf16>, vector<250x128xbf16>, vector<20x128xf32> -> vector<20x128xf32>
    %c0_9 = arith.constant 0 : index
    %c0_10 = arith.constant 0 : index
    %7 = vector.load %arg6[%c0_9, %c0_10] : memref<250x128xbf16, #tpu.memory_space<vmem>>, vector<250x128xbf16>
    %cst_11 = arith.constant dense<0.000000e+00> : vector<20x128xf32>
    %8 = tpu.matmul %0, %7, %cst_11 {dimension_numbers = #tpu.dot_dimension_numbers<[1], [0], [0], [1], [0, 0, 1, 1], [], []>} : vector<20x250xbf16>, vector<250x128xbf16>, vector<20x128xf32> -> vector<20x128xf32>
    %9 = arith.maximumf %2, %4 : vector<20x128xf32>
    %10 = arith.maximumf %6, %8 : vector<20x128xf32>
    %11 = arith.maximumf %9, %10 : vector<20x128xf32>
    %c0_12 = arith.constant 0 : index
    %c0_13 = arith.constant 0 : index
    %12 = vector.load %arg2[%c0_12, %c0_13] : memref<20x1xf32, #tpu.memory_space<vmem>>, vector<20x1xf32>
    %13 = vector.broadcast %12 : vector<20x1xf32> to vector<20x128xf32>
    %14 = arith.addf %11, %13 : vector<20x128xf32>
    %cst_14 = arith.constant 0.000000e+00 : f32
    %15 = vector.broadcast %cst_14 : f32 to vector<20x128xf32>
    %16 = arith.maximumf %14, %15 : vector<20x128xf32>
    %17 = arith.truncf %16 : vector<20x128xf32> to vector<20x128xbf16>
    %c0_15 = arith.constant 0 : index
    %c0_16 = arith.constant 0 : index
    %18 = vector.load %arg7[%c0_15, %c0_16] : memref<20x128xbf16, #tpu.memory_space<vmem>>, vector<20x128xbf16>
    tpu.vector_store %arg7[%c0_15, %c0_16], %17 {strides = array<i32>} : memref<20x128xbf16, #tpu.memory_space<vmem>>, vector<20x128xbf16>,
    return
  }
  func.func @transform_0(%arg0: i32) -> (i32, i32) {
    %c0_i32 = arith.constant 0 : i32
    %c0_i32_0 = arith.constant 0 : i32
    %c0_i32_1 = arith.constant 0 : i32
    return %c0_i32, %c0_i32_0 : i32, i32
  }
  func.func @transform_1(%arg0: i32) -> (i32, i32) {
    %c0_i32 = arith.constant 0 : i32
    %c0_i32_0 = arith.constant 0 : i32
    %c0_i32_1 = arith.constant 0 : i32
    return %c0_i32, %c0_i32_0 : i32, i32
  }
  func.func @transform_2(%arg0: i32) -> (i32, i32) {
    %c0_i32 = arith.constant 0 : i32
    %c0_i32_0 = arith.constant 0 : i32
    return %c0_i32, %arg0 : i32, i32
  }
  func.func @transform_3(%arg0: i32) -> (i32, i32) {
    %c0_i32 = arith.constant 0 : i32
    %c0_i32_0 = arith.constant 0 : i32
    return %c0_i32, %arg0 : i32, i32
  }
  func.func @transform_4(%arg0: i32) -> (i32, i32) {
    %c0_i32 = arith.constant 0 : i32
    %c0_i32_0 = arith.constant 0 : i32
    return %c0_i32, %arg0 : i32, i32
  }
  func.func @transform_5(%arg0: i32) -> (i32, i32) {
    %c0_i32 = arith.constant 0 : i32
    %c0_i32_0 = arith.constant 0 : i32
    return %c0_i32, %arg0 : i32, i32
  }
  func.func @transform_6(%arg0: i32) -> (i32, i32) {
    %c0_i32 = arith.constant 0 : i32
    %c0_i32_0 = arith.constant 0 : i32
    return %c0_i32, %arg0 : i32, i32
  }
}

module attributes {stable_mosaic.version = 11 : i64} {
  func.func @_mlp_head_kernel(%arg0: i32, %arg1: memref<2x320xbf16, #tpu.memory_space<vmem>>, %arg2: memref<320x50xbf16, #tpu.memory_space<vmem>>, %arg3: memref<1x50xf32, #tpu.memory_space<vmem>>, %arg4: memref<50x10xbf16, #tpu.memory_space<vmem>>, %arg5: memref<1x10xf32, #tpu.memory_space<vmem>>, %arg6: memref<2x10xf32, #tpu.memory_space<vmem>>) attributes {dimension_semantics = [#tpu.dimension_semantics<arbitrary>], iteration_bounds = array<i64: 1>, scalar_prefetch = 0 : i64, scratch_operands = 0 : i64, tpu.core_type = #tpu.core_type<tc>, window_params = [{pipeline_mode = #tpu.pipeline_mode<synchronous>, transform_indices = @transform_0, window_bounds = array<i64: 2, 320>}, {pipeline_mode = #tpu.pipeline_mode<synchronous>, transform_indices = @transform_1, window_bounds = array<i64: 320, 50>}, {pipeline_mode = #tpu.pipeline_mode<synchronous>, transform_indices = @transform_2, window_bounds = array<i64: 1, 50>}, {pipeline_mode = #tpu.pipeline_mode<synchronous>, transform_indices = @transform_3, window_bounds = array<i64: 50, 10>}, {pipeline_mode = #tpu.pipeline_mode<synchronous>, transform_indices = @transform_4, window_bounds = array<i64: 1, 10>}, {pipeline_mode = #tpu.pipeline_mode<synchronous>, transform_indices = @transform_5, window_bounds = array<i64: 2, 10>}]} {
    %c0 = arith.constant 0 : index
    %c0_0 = arith.constant 0 : index
    %0 = vector.load %arg1[%c0, %c0_0] : memref<2x320xbf16, #tpu.memory_space<vmem>>, vector<2x320xbf16>
    %c0_1 = arith.constant 0 : index
    %c0_2 = arith.constant 0 : index
    %1 = vector.load %arg2[%c0_1, %c0_2] : memref<320x50xbf16, #tpu.memory_space<vmem>>, vector<320x50xbf16>
    %cst = arith.constant dense<0.000000e+00> : vector<2x50xf32>
    %2 = tpu.matmul %0, %1, %cst {dimension_numbers = #tpu.dot_dimension_numbers<[1], [0], [0], [1], [0, 0, 1, 1], [], []>} : vector<2x320xbf16>, vector<320x50xbf16>, vector<2x50xf32> -> vector<2x50xf32>
    %c0_3 = arith.constant 0 : index
    %c0_4 = arith.constant 0 : index
    %3 = vector.load %arg3[%c0_3, %c0_4] : memref<1x50xf32, #tpu.memory_space<vmem>>, vector<1x50xf32>
    %4 = vector.broadcast %3 : vector<1x50xf32> to vector<2x50xf32>
    %5 = arith.addf %2, %4 : vector<2x50xf32>
    %cst_5 = arith.constant 0.000000e+00 : f32
    %6 = vector.broadcast %cst_5 : f32 to vector<2x50xf32>
    %7 = arith.maximumf %5, %6 : vector<2x50xf32>
    %8 = arith.truncf %7 : vector<2x50xf32> to vector<2x50xbf16>
    %c0_6 = arith.constant 0 : index
    %c0_7 = arith.constant 0 : index
    %9 = vector.load %arg4[%c0_6, %c0_7] : memref<50x10xbf16, #tpu.memory_space<vmem>>, vector<50x10xbf16>
    %cst_8 = arith.constant dense<0.000000e+00> : vector<2x10xf32>
    %10 = tpu.matmul %8, %9, %cst_8 {dimension_numbers = #tpu.dot_dimension_numbers<[1], [0], [0], [1], [0, 0, 1, 1], [], []>} : vector<2x50xbf16>, vector<50x10xbf16>, vector<2x10xf32> -> vector<2x10xf32>
    %c0_9 = arith.constant 0 : index
    %c0_10 = arith.constant 0 : index
    %11 = vector.load %arg5[%c0_9, %c0_10] : memref<1x10xf32, #tpu.memory_space<vmem>>, vector<1x10xf32>
    %12 = vector.broadcast %11 : vector<1x10xf32> to vector<2x10xf32>
    %13 = arith.addf %10, %12 : vector<2x10xf32>
    %cst_11 = arith.constant dense<0xFF800000> : vector<2xf32>
    %14 = vector.multi_reduction <maximumf>, %13, %cst_11 [1] : vector<2x10xf32> to vector<2xf32>
    %15 = vector.shape_cast %14 : vector<2xf32> to vector<2x1xf32>
    %16 = vector.broadcast %15 : vector<2x1xf32> to vector<2x10xf32>
    %17 = arith.subf %13, %16 : vector<2x10xf32>
    %18 = math.exp %17 : vector<2x10xf32>
    %cst_12 = arith.constant dense<0.000000e+00> : vector<2xf32>
    %19 = vector.multi_reduction <add>, %18, %cst_12 [1] : vector<2x10xf32> to vector<2xf32>
    %20 = vector.shape_cast %19 : vector<2xf32> to vector<2x1xf32>
    %21 = math.log %20 : vector<2x1xf32>
    %22 = vector.broadcast %21 : vector<2x1xf32> to vector<2x10xf32>
    %23 = arith.subf %17, %22 : vector<2x10xf32>
    %c0_13 = arith.constant 0 : index
    %c0_14 = arith.constant 0 : index
    %24 = vector.load %arg6[%c0_13, %c0_14] : memref<2x10xf32, #tpu.memory_space<vmem>>, vector<2x10xf32>
    tpu.vector_store %arg6[%c0_13, %c0_14], %23 {strides = array<i32>} : memref<2x10xf32, #tpu.memory_space<vmem>>, vector<2x10xf32>,
    return
  }
  func.func @transform_0(%arg0: i32) -> (i32, i32) {
    %c0_i32 = arith.constant 0 : i32
    %c0_i32_0 = arith.constant 0 : i32
    %c0_i32_1 = arith.constant 0 : i32
    return %c0_i32, %c0_i32_0 : i32, i32
  }
  func.func @transform_1(%arg0: i32) -> (i32, i32) {
    %c0_i32 = arith.constant 0 : i32
    %c0_i32_0 = arith.constant 0 : i32
    %c0_i32_1 = arith.constant 0 : i32
    return %c0_i32, %c0_i32_0 : i32, i32
  }
  func.func @transform_2(%arg0: i32) -> (i32, i32) {
    %c0_i32 = arith.constant 0 : i32
    %c0_i32_0 = arith.constant 0 : i32
    %c0_i32_1 = arith.constant 0 : i32
    return %c0_i32, %c0_i32_0 : i32, i32
  }
  func.func @transform_3(%arg0: i32) -> (i32, i32) {
    %c0_i32 = arith.constant 0 : i32
    %c0_i32_0 = arith.constant 0 : i32
    %c0_i32_1 = arith.constant 0 : i32
    return %c0_i32, %c0_i32_0 : i32, i32
  }
  func.func @transform_4(%arg0: i32) -> (i32, i32) {
    %c0_i32 = arith.constant 0 : i32
    %c0_i32_0 = arith.constant 0 : i32
    %c0_i32_1 = arith.constant 0 : i32
    return %c0_i32, %c0_i32_0 : i32, i32
  }
  func.func @transform_5(%arg0: i32) -> (i32, i32) {
    %c0_i32 = arith.constant 0 : i32
    %c0_i32_0 = arith.constant 0 : i32
    %c0_i32_1 = arith.constant 0 : i32
    return %c0_i32, %c0_i32_0 : i32, i32
  }
}

</mosaic_0001>

<bundles_post_ra>
// kernel: my_network_forward.3
= control target key start
LH: loop header
LB: loop body
LE: loop exit
PB: predicated region body
PF: predicated region fallthrough
CT: control target
= control target key end

     0   :  { %vm72_vm0 = vcmask 1043456   ;;  %vm73_vm1 = vcmask 1044480   ;;  %v752_v0 = vmov 0.0   ;;  %v753_v2 = vmov 65535   ;;  %s937_s2 = inlined_call_operand.vmem [shape: bf16[25,384], index: 2, kind: input, shape index: {}]   ;;  %s938_s0 = inlined_call_operand.vmem [shape: bf16[10,25], index: 0, kind: input, shape index: {}]   ;;  %s939_s3 = inlined_call_operand.vmem [shape: bf16[25,384], index: 3, kind: input, shape index: {}]   ;;  %s940_s4 = inlined_call_operand.vmem [shape: bf16[25,384], index: 4, kind: input, shape index: {}]   ;;  %s941_s5 = inlined_call_operand.vmem [shape: bf16[25,384], index: 5, kind: input, shape index: {}]   ;;  %s942_s1 = inlined_call_operand.vmem [shape: f32[10,1], index: 1, kind: input, shape index: {}]   ;;  %s943_s6 = inlined_call_operand.vmem [shape: bf16[10,384], index: 6, kind: output, shape index: {}]  }
   0x1   :  { %682 = vmatprep.subr.bf16.mxu1 %v752_v0  ;;  %v719_v1 = vld [vmem:[%s937_s2 + $0x4] ss:$12 sps:$4 sm:$0xff]   ;;  %v74_v3 = vsel %vm72_vm0, 4294967295, %v753_v2  ;;  %v721_v4 = vld [vmem:[%s937_s2 + $0x8] ss:$12 sps:$4 sm:$0xff]   ;;  %vm754_vm2 = vmmov 0  }
   0x2   :  { %686 = vmatprep.mubr.msk.bf16.mxu1 %vm754_vm2, %v752_v0  ;;  %85 = vmatprep.subr.bf16.mxu0 %v719_v1  ;;  %v722_v5 = vld [vmem:[%s937_s2] ss:$12 sps:$4 sm:$0xff]   ;;  %v803_v6 = vsel %vm73_vm1, %v74_v3, 0  ;;  %v723_v7 = vld [vmem:[%s937_s2 + $0x1c] ss:$12 sps:$4 sm:$0x1f]  }
   0x3   :  { %683 = vmatpush3.bf16.msra.mxu1 %v721_v4  ;;  %86 = vmatpush1.bf16.msra.mxu0 %v722_v5  ;;  %v725_v8 = vld [vmem:[%s937_s2 + $0x20] ss:$12 sps:$4 sm:$0x1f]   ;;  %v80_v9 = vand.u32 %v723_v7, %v803_v6  ;;  %v726_v10 = vld [vmem:[%s937_s2 + $0x18] ss:$12 sps:$4 sm:$0x1f]  }
   0x4   :  { %684 = vmatprep.subr.bf16.mxu1 %v752_v0  ;;  %v755_v11 = vmov 0   ;;  %v83_v12 = vand.u32 %v725_v8, %v803_v6  ;;  %v822_v13 = vld [vmem:[%s938_s0] sm:$0x1f]   ;;  %v77_v14 = vand.u32 %v726_v10, %v803_v6  ;;  %vm68_vm3 = vcmask 203776   ;;  %v731_v17 = vld [vmem:[%s939_s3 + $0x8] ss:$12 sps:$4 sm:$0xff]  }
   0x5   :  { %117 = vmatprep.mubr.bf16.mxu0 %v755_v11  ;;  %718 = vset.pattern.permute.xlu0 %v755_v11  ;;  %v728_v15 = vld [vmem:[%s939_s3] ss:$12 sps:$4 sm:$0xff]   ;;  %v730_v16 = vld [vmem:[%s939_s3 + $0x4] ss:$12 sps:$4 sm:$0xff]   ;;  %v739_v27 = vld [vmem:[%s940_s4 + $0x8] ss:$12 sps:$4 sm:$0xff]  }
   0x6   :  { %87 = vmatprep.subr.bf16.mxu0 %v80_v9  ;;  %v732_v18 = vld [vmem:[%s939_s3 + $0x18] ss:$12 sps:$4 sm:$0x1f]   ;;  %v734_v19 = vld [vmem:[%s939_s3 + $0x1c] ss:$12 sps:$4 sm:$0x1f]  }
   0x7   :  { %685 = vmatpush3.bf16.msra.mxu1 %v83_v12  ;;  %88 = vmatpush1.bf16.msra.mxu0 %v77_v14  ;;  %v735_v20 = vld [vmem:[%s939_s3 + $0x20] ss:$12 sps:$4 sm:$0x1f]   ;;  %v210_v21 = vand.u32 %v734_v19, %v803_v6  ;;  %v207_v23 = vand.u32 %v732_v18, %v803_v6  ;;  %v738_v24 = vld [vmem:[%s940_s4 + $0x4] ss:$12 sps:$4 sm:$0xff]  }
   0x8   :  { %690 = vmatprep.subr.bf16.mxu1 %v752_v0  ;;  %215 = vmatprep.subr.bf16.mxu0 %v730_v16  ;;  %v213_v22 = vand.u32 %v735_v20, %v803_v6  ;;  %v742_v25 = vld [vmem:[%s940_s4 + $0x1c] ss:$12 sps:$4 sm:$0x1f]   ;;  %v740_v26 = vld [vmem:[%s940_s4 + $0x18] ss:$12 sps:$4 sm:$0x1f]  }
   0x9   :  { %v743_v28 = vld [vmem:[%s940_s4 + $0x20] ss:$12 sps:$4 sm:$0x1f]   ;;  %v340_v30 = vand.u32 %v742_v25, %v803_v6  ;;  %v337_v33 = vand.u32 %v740_v26, %v803_v6  ;;  %v746_v34 = vld [vmem:[%s941_s5 + $0x4] ss:$12 sps:$4 sm:$0xff]  }
   0xa   :  { %687 = vmatmul.mubr.msk.bf16.vlgmr.msra.gmra.mrb[0].mxu1 %vm68_vm3, %v822_v13  ;;  %636 = vmatmul.mubr.msk.bf16.vlgmr.msra.gmra.mrb[0].mxu0 %vm68_vm3, %v822_v13  ;;  %v736_v29 = vld [vmem:[%s940_s4] ss:$12 sps:$4 sm:$0xff]   ;;  %v343_v31 = vand.u32 %v743_v28, %v803_v6  ;;  %v750_v35 = vld [vmem:[%s941_s5 + $0x1c] ss:$12 sps:$4 sm:$0x1f]  }
   0xb   :  { %691 = vmatpush3.bf16.msra.mxu1 %v731_v17  ;;  %216 = vmatpush1.bf16.msra.mxu0 %v728_v15  ;;  %v577_v32 = vld [vmem:[%s942_s1] sm:$0xff]  ;;  %v747_v36 = vld [vmem:[%s941_s5 + $0x8] ss:$12 sps:$4 sm:$0xff]   ;;  %v470_v41 = vand.u32 %v750_v35, %v803_v6 }
   0xc   :  { %692 = vmatprep.subr.bf16.mxu1 %v752_v0  ;;  %217 = vmatprep.subr.bf16.mxu0 %v210_v21  ;;  %v751_v37 = vld [vmem:[%s941_s5 + $0x20] ss:$12 sps:$4 sm:$0x1f]   ;;  %v578_v38 = vld [vmem:[%s942_s1 + $0x8] sm:$0x3] }
   0xd   :  { %694 = vmatprep.mubr.msk.bf16.mxu1 %vm754_vm2, %v752_v0  ;;  %247 = vmatprep.mubr.bf16.mxu0 %v755_v11  ;;  %v744_v39 = vld [vmem:[%s941_s5] ss:$12 sps:$4 sm:$0xff]   ;;  %v748_v40 = vld [vmem:[%s941_s5 + $0x18] ss:$12 sps:$4 sm:$0x1f]   ;;  %v473_v42 = vand.u32 %v751_v37, %v803_v6 }
   0xe   :  { %581 = vperm.xlu0 %718, %v577_v32   ;;  %v467_v43 = vand.u32 %v748_v40, %v803_v6 }
   0xf   :  { %693 = vmatpush3.bf16.msra.mxu1 %v213_v22  ;;  %218 = vmatpush1.bf16.msra.mxu0 %v207_v23 }
  0x10   :  { %698 = vmatprep.subr.bf16.mxu1 %v752_v0  ;;  %345 = vmatprep.subr.bf16.mxu0 %v738_v24 }
  0x12   :  { %695 = vmatmul.mubr.msk.bf16.vlgmr.msra.gmra.mrb[4].mxu1 %vm68_vm3, %v822_v13  ;;  %644 = vmatmul.mubr.msk.bf16.vlgmr.msra.gmra.mrb[4].mxu0 %vm68_vm3, %v822_v13 }
  0x13   :  { %699 = vmatpush3.bf16.msra.mxu1 %v739_v27  ;;  %346 = vmatpush1.bf16.msra.mxu0 %v736_v29 }
  0x14   :  { %700 = vmatprep.subr.bf16.mxu1 %v752_v0  ;;  %347 = vmatprep.subr.bf16.mxu0 %v340_v30 }
  0x15   :  { %702 = vmatprep.mubr.msk.bf16.mxu1 %vm754_vm2, %v752_v0  ;;  %377 = vmatprep.mubr.bf16.mxu0 %v755_v11 }
  0x16   :  { %586 = vperm.xlu0 %718, %v578_v38  }
  0x17   :  { %701 = vmatpush3.bf16.msra.mxu1 %v343_v31  ;;  %348 = vmatpush1.bf16.msra.mxu0 %v337_v33 }
  0x18   :  { %706 = vmatprep.subr.bf16.mxu1 %v752_v0  ;;  %475 = vmatprep.subr.bf16.mxu0 %v746_v34 }
  0x1a   :  { %703 = vmatmul.mubr.msk.bf16.vlgmr.msra.gmra.mrb[8].mxu1 %vm68_vm3, %v822_v13  ;;  %652 = vmatmul.mubr.msk.bf16.vlgmr.msra.gmra.mrb[8].mxu0 %vm68_vm3, %v822_v13 }
  0x1b   :  { %707 = vmatpush3.bf16.msra.mxu1 %v747_v36  ;;  %476 = vmatpush1.bf16.msra.mxu0 %v744_v39 }
  0x1c   :  { %708 = vmatprep.subr.bf16.mxu1 %v752_v0  ;;  %477 = vmatprep.subr.bf16.mxu0 %v470_v41 }
  0x1d   :  { %710 = vmatprep.mubr.msk.bf16.mxu1 %vm754_vm2, %v752_v0  ;;  %507 = vmatprep.mubr.bf16.mxu0 %v755_v11 }
  0x1f   :  { %709 = vmatpush3.bf16.msra.mxu1 %v473_v42  ;;  %478 = vmatpush1.bf16.msra.mxu0 %v467_v43 }
  0x22   :  { %711 = vmatmul.mubr.msk.bf16.vlgmr.msra.gmra.mrb[12].mxu1 %vm68_vm3, %v822_v13  ;;  %660 = vmatmul.mubr.msk.bf16.vlgmr.msra.gmra.mrb[12].mxu0 %vm68_vm3, %v822_v13 }
  0x8d   :  { %v582_v11 = vpop.permute.xlu0 %581 }
  0x95   :  { %v587_v32 = vpop.permute.xlu0 %586 }
  0xdd   :  { %v162_v44 = vpop.f32.mrb[0].mxu1  ;;  %v119_v45 = vpop.f32.mrb[0].mxu0 }
  0xde   :  { %v688_v46 = vpop.f32.mrb[1].mxu1  ;;  %v121_v47 = vpop.f32.mrb[1].mxu0 }
  0xdf   :  { %v165_v48 = vpop.f32.mrb[2].mxu1  ;;  %v123_v49 = vpop.f32.mrb[2].mxu0 }
  0xe0   :  { %v689_v50 = vpop.f32.mrb[3].mxu1  ;;  %v125_v51 = vpop.f32.mrb[3].mxu0 }
  0xe5   :  { %v292_v52 = vpop.f32.mrb[4].mxu1  ;;  %v249_v54 = vpop.f32.mrb[4].mxu0 }
  0xe6   :  { %v561_v53 = vmax.f32 %v162_v44, %v292_v52  ;;  %v696_v55 = vpop.f32.mrb[5].mxu1  ;;  %v559_v56 = vmax.f32 %v119_v45, %v249_v54  ;;  %v251_v57 = vpop.f32.mrb[5].mxu0 }
  0xe7   :  { %v295_v58 = vpop.f32.mrb[6].mxu1  ;;  %v560_v59 = vmax.f32 %v121_v47, %v251_v57  ;;  %v253_v61 = vpop.f32.mrb[6].mxu0 }
  0xe8   :  { %v564_v60 = vmax.f32 %v165_v48, %v295_v58  ;;  %v697_v62 = vpop.f32.mrb[7].mxu1  ;;  %v562_v63 = vmax.f32 %v123_v49, %v253_v61  ;;  %v255_v0 = vpop.f32.mrb[7].mxu0 }
  0xe9   :  { %v563_v1 = vmax.f32 %v125_v51, %v255_v0 }
  0xed   :  { %v422_v2 = vpop.f32.mrb[8].mxu1  ;;  %v379_v3 = vpop.f32.mrb[8].mxu0 }
  0xee   :  { %v704_v4 = vpop.f32.mrb[9].mxu1  ;;  %v381_v5 = vpop.f32.mrb[9].mxu0 }
  0xef   :  { %v425_v6 = vpop.f32.mrb[10].mxu1  ;;  %v383_v7 = vpop.f32.mrb[10].mxu0 }
  0xf0   :  { %v705_v8 = vpop.f32.mrb[11].mxu1  ;;  %v385_v9 = vpop.f32.mrb[11].mxu0 }
  0xf5   :  { %v552_v10 = vpop.f32.mrb[12].mxu1  ;;  %v509_v13 = vpop.f32.mrb[12].mxu0 }
  0xf6   :  { %v567_v12 = vmax.f32 %v422_v2, %v552_v10  ;;  %v712_v14 = vpop.f32.mrb[13].mxu1  ;;  %v565_v15 = vmax.f32 %v379_v3, %v509_v13  ;;  %v511_v16 = vpop.f32.mrb[13].mxu0 }
  0xf7   :  { %v555_v17 = vpop.f32.mrb[14].mxu1  ;;  %v566_v19 = vmax.f32 %v381_v5, %v511_v16  ;;  %v513_v21 = vpop.f32.mrb[14].mxu0 }
  0xf8   :  { %v573_v18 = vmax.f32 %v561_v53, %v567_v12  ;;  %v570_v20 = vmax.f32 %v425_v6, %v555_v17  ;;  %v713_v22 = vpop.f32.mrb[15].mxu1  ;;  %v571_v23 = vmax.f32 %v559_v56, %v565_v15  ;;  %v568_v24 = vmax.f32 %v383_v7, %v513_v21  ;;  %v515_v25 = vpop.f32.mrb[15].mxu0 }
  0xf9   :  { %v572_v27 = vmax.f32 %v560_v59, %v566_v19  ;;  %v569_v29 = vmax.f32 %v385_v9, %v515_v25 }
  0xfa   :  { %v591_v26 = vadd.f32 %v582_v11, %v573_v18  ;;  %v576_v28 = vmax.f32 %v564_v60, %v570_v20  ;;  %v589_v30 = vadd.f32 %v582_v11, %v571_v23  ;;  %v574_v31 = vmax.f32 %v562_v63, %v568_v24 }
  0xfb   :  { %v590_v34 = vadd.f32 %v582_v11, %v572_v27  ;;  %v575_v35 = vmax.f32 %v563_v1, %v569_v29 }
  0xfc   :  { %v597_v33 = vmax.f32 %v591_v26, 0.0  ;;  %v594_v36 = vadd.f32 %v587_v32, %v576_v28  ;;  %v595_v37 = vmax.f32 %v589_v30, 0.0  ;;  %v592_v38 = vadd.f32 %v587_v32, %v574_v31 }
  0xfd   :  { %v596_v40 = vmax.f32 %v590_v34, 0.0  ;;  %v593_v41 = vadd.f32 %v587_v32, %v575_v35 }
  0xfe   :  { %v667_v39 = vpack.c.bf16 %v597_v33, %v597_v33  ;;  %v600_v42 = vmax.f32 %v594_v36, 0.0  ;;  %v598_v43 = vmax.f32 %v592_v38, 0.0 }
  0xff   :  { %v666_v44 = vpack.c.bf16 %v596_v40, %v595_v37  ;;  %v599_v45 = vmax.f32 %v593_v41, 0.0 }
 0x100   :  { %622 = vst [vmem:[%s943_s6 + $0x8] sm:$0xf] %v667_v39  ;;  %v669_v46 = vpack.c.bf16 %v600_v42, %v600_v42 }
 0x101   :  { %621 = vst [vmem:[%s943_s6] sm:$0xff] %v666_v44  ;;  %v668_v47 = vpack.c.bf16 %v599_v45, %v598_v43 }
 0x102   :  { %624 = vst [vmem:[%s943_s6 + $0x14] sm:$0x1] %v669_v46 }
 0x103   :  { %623 = vst [vmem:[%s943_s6 + $0xc] sm:$0x11] %v668_v47 }

// kernel: my_network_forward.4
= control target key start
LH: loop header
LB: loop body
LE: loop exit
PB: predicated region body
PF: predicated region fallthrough
CT: control target
= control target key end

     0   :  { %v1090_v1 = vmov 0   ;;  %vm176_vm0 = vcmask 1044480   ;;  %vm169_vm1 = vcmask 998400   ;;  %s1366_s2 = inlined_call_operand.vmem [shape: bf16[250,128], index: 2, kind: input, shape index: {}]   ;;  %s1367_s3 = inlined_call_operand.vmem [shape: bf16[250,128], index: 3, kind: input, shape index: {}]   ;;  %s1368_s0 = inlined_call_operand.vmem [shape: bf16[20,250], index: 0, kind: input, shape index: {}]   ;;  %s1369_s4 = inlined_call_operand.vmem [shape: bf16[250,128], index: 4, kind: input, shape index: {}]   ;;  %s1370_s5 = inlined_call_operand.vmem [shape: bf16[250,128], index: 5, kind: input, shape index: {}]   ;;  %s1371_s1 = inlined_call_operand.vmem [shape: f32[20,1], index: 1, kind: input, shape index: {}]   ;;  %s1372_s6 = inlined_call_operand.vmem [shape: bf16[20,128], index: 6, kind: output, shape index: {}]  }
   0x1   :  { %v1021_v0 = vld [vmem:[%s1366_s2 + $0x40] sm:$0xff]   ;;  %1019 = vset.pattern.permute.xlu0 %v1090_v1  ;;  %1020 = vset.pattern.permute.xlu1 %v1090_v1  ;;  %v1025_v5 = vld [vmem:[%s1366_s2 + $0x48] sm:$0xff]   ;;  %v1029_v9 = vld [vmem:[%s1366_s2 + $0x50] sm:$0xff]  }
   0x2   :  { %v1022_v2 = vld [vmem:[%s1367_s3 + $0x40] sm:$0xff]   ;;  %902 = vmatprep.subr.bf16.mxu0 %v1021_v0  ;;  %v1026_v6 = vld [vmem:[%s1367_s3 + $0x48] sm:$0xff]   ;;  %v1030_v10 = vld [vmem:[%s1367_s3 + $0x50] sm:$0xff]  }
   0x3   :  { %v1023_v3 = vld [vmem:[%s1366_s2] sm:$0xff]   ;;  %930 = vmatprep.subr.bf16.mxu1 %v1022_v2  ;;  %v1027_v7 = vld [vmem:[%s1366_s2 + $0x8] sm:$0xff]   ;;  %v1031_v11 = vld [vmem:[%s1366_s2 + $0x10] sm:$0xff]  }
   0x4   :  { %v1024_v4 = vld [vmem:[%s1367_s3] sm:$0xff]   ;;  %903 = vmatpush3.bf16.msra.mxu0 %v1023_v3  ;;  %v1028_v8 = vld [vmem:[%s1367_s3 + $0x8] sm:$0xff]   ;;  %v1032_v12 = vld [vmem:[%s1367_s3 + $0x10] sm:$0xff]  }
   0x5   :  { %931 = vmatpush3.bf16.msra.mxu1 %v1024_v4  ;;  %904 = vmatprep.subr.bf16.mxu0 %v1025_v5  ;;  %v1033_v13 = vld [vmem:[%s1366_s2 + $0x58] sm:$0xff]   ;;  %v1037_v17 = vld [vmem:[%s1366_s2 + $0x60] sm:$0xff]   ;;  %v1041_v21 = vld [vmem:[%s1366_s2 + $0x68] sm:$0xff]  }
   0x6   :  { %932 = vmatprep.subr.bf16.mxu1 %v1026_v6  ;;  %v1034_v14 = vld [vmem:[%s1367_s3 + $0x58] sm:$0xff]   ;;  %v1038_v18 = vld [vmem:[%s1367_s3 + $0x60] sm:$0xff]   ;;  %v1042_v22 = vld [vmem:[%s1367_s3 + $0x68] sm:$0xff]  }
   0x7   :  { %v1035_v15 = vld [vmem:[%s1366_s2 + $0x18] sm:$0xff]   ;;  %v1039_v19 = vld [vmem:[%s1366_s2 + $0x20] sm:$0xff]   ;;  %v1043_v23 = vld [vmem:[%s1366_s2 + $0x28] sm:$0xff]  }
   0x8   :  { %905 = vmatpush3.bf16.msra.mxu0 %v1027_v7  ;;  %v1036_v16 = vld [vmem:[%s1367_s3 + $0x18] sm:$0xff]   ;;  %v1040_v20 = vld [vmem:[%s1367_s3 + $0x20] sm:$0xff]   ;;  %v1044_v24 = vld [vmem:[%s1367_s3 + $0x28] sm:$0xff]  }
   0x9   :  { %933 = vmatpush3.bf16.msra.mxu1 %v1028_v8  ;;  %906 = vmatprep.subr.bf16.mxu0 %v1029_v9  ;;  %v1045_v25 = vld [vmem:[%s1366_s2 + $0x70] sm:$0xff]   ;;  %v1049_v29 = vld [vmem:[%s1366_s2 + $0x78] sm:$0x1f]   ;;  %v1227_v33 = vld [vmem:[%s1368_s0 + $0x4] ss:$8 sps:$4 sm:$0xff]  }
   0xa   :  { %934 = vmatprep.subr.bf16.mxu1 %v1030_v10  ;;  %v1046_v26 = vld [vmem:[%s1367_s3 + $0x70] sm:$0xff]   ;;  %v1050_v30 = vld [vmem:[%s1367_s3 + $0x78] sm:$0x1f]   ;;  %v1232_v34 = vld [vmem:[%s1368_s0] ss:$8 sps:$4 sm:$0xff]   ;;  %835 = vmatprep.mubr.msk.bf16.mxu0 %vm169_vm1, %v1227_v33 }
   0xb   :  { %v1047_v27 = vld [vmem:[%s1366_s2 + $0x30] sm:$0xff]   ;;  %v1051_v31 = vld [vmem:[%s1366_s2 + $0x38] sm:$0xff]   ;;  %853 = vmatprep.mubr.msk.bf16.mxu1 %vm169_vm1, %v1227_v33  ;;  %v1056_v35 = vld [vmem:[%s1369_s4 + $0x40] sm:$0xff]  }
   0xc   :  { %907 = vmatpush3.bf16.msra.mxu0 %v1031_v11  ;;  %v1048_v28 = vld [vmem:[%s1367_s3 + $0x30] sm:$0xff]   ;;  %v1052_v32 = vld [vmem:[%s1367_s3 + $0x38] sm:$0xff]   ;;  %v1057_v36 = vld [vmem:[%s1370_s5 + $0x40] sm:$0xff]  }
   0xd   :  { %935 = vmatpush3.bf16.msra.mxu1 %v1032_v12  ;;  %908 = vmatprep.subr.bf16.mxu0 %v1033_v13  ;;  %v1058_v37 = vld [vmem:[%s1369_s4] sm:$0xff]   ;;  %v1060_v39 = vld [vmem:[%s1369_s4 + $0x48] sm:$0xff]   ;;  %v1064_v43 = vld [vmem:[%s1369_s4 + $0x50] sm:$0xff]  }
   0xe   :  { %936 = vmatprep.subr.bf16.mxu1 %v1034_v14  ;;  %v1059_v38 = vld [vmem:[%s1370_s5] sm:$0xff]   ;;  %v1061_v40 = vld [vmem:[%s1370_s5 + $0x48] sm:$0xff]   ;;  %v1065_v44 = vld [vmem:[%s1370_s5 + $0x50] sm:$0xff]  }
   0xf   :  { %v1062_v41 = vld [vmem:[%s1369_s4 + $0x8] sm:$0xff]   ;;  %v1066_v45 = vld [vmem:[%s1369_s4 + $0x10] sm:$0xff]   ;;  %v1068_v47 = vld [vmem:[%s1369_s4 + $0x58] sm:$0xff]  }
  0x10   :  { %909 = vmatpush3.bf16.msra.mxu0 %v1035_v15  ;;  %v1063_v42 = vld [vmem:[%s1370_s5 + $0x8] sm:$0xff]   ;;  %v1067_v46 = vld [vmem:[%s1370_s5 + $0x10] sm:$0xff]   ;;  %v1069_v48 = vld [vmem:[%s1370_s5 + $0x58] sm:$0xff]  }
  0x11   :  { %937 = vmatpush3.bf16.msra.mxu1 %v1036_v16  ;;  %910 = vmatprep.subr.bf16.mxu0 %v1037_v17  ;;  %v1070_v49 = vld [vmem:[%s1369_s4 + $0x18] sm:$0xff]   ;;  %v1072_v51 = vld [vmem:[%s1369_s4 + $0x60] sm:$0xff]   ;;  %v26_v55 = vld [vmem:[%s1368_s0 + $0x10] sm:$0x33] }
  0x12   :  { %938 = vmatprep.subr.bf16.mxu1 %v1038_v18  ;;  %v1071_v50 = vld [vmem:[%s1370_s5 + $0x18] sm:$0xff]   ;;  %v1073_v52 = vld [vmem:[%s1370_s5 + $0x60] sm:$0xff]   ;;  %v818_v56 = vcombine.high %v26_v55, %v26_v55  ;;  %v1077_v57 = vld [vmem:[%s1369_s4 + $0x68] sm:$0xff]   ;;  %v817_v58 = vcombine.low %v26_v55, %v26_v55 }
  0x13   :  { %v1074_v53 = vld [vmem:[%s1369_s4 + $0x20] sm:$0xff]   ;;  %v1078_v59 = vld [vmem:[%s1370_s5 + $0x68] sm:$0xff]   ;;  %v1082_v62 = vld [vmem:[%s1369_s4 + $0x70] sm:$0xff]  }
  0x14   :  { %911 = vmatpush3.bf16.msra.mxu0 %v1039_v19  ;;  %v1075_v54 = vld [vmem:[%s1370_s5 + $0x20] sm:$0xff]   ;;  %v1080_v60 = vld [vmem:[%s1369_s4 + $0x28] sm:$0xff]   ;;  %v1083_v63 = vld [vmem:[%s1370_s5 + $0x70] sm:$0xff]  }
  0x15   :  { %939 = vmatpush3.bf16.msra.mxu1 %v1040_v20  ;;  %912 = vmatprep.subr.bf16.mxu0 %v1041_v21  ;;  %v1081_v61 = vld [vmem:[%s1370_s5 + $0x28] sm:$0xff]   ;;  %v1084_v0 = vld [vmem:[%s1369_s4 + $0x30] sm:$0xff]   ;;  %v1086_v2 = vld [vmem:[%s1369_s4 + $0x78] sm:$0x1f]  }
  0x16   :  { %940 = vmatprep.subr.bf16.mxu1 %v1042_v22  ;;  %v1085_v1 = vld [vmem:[%s1370_s5 + $0x30] sm:$0xff]   ;;  %v1087_v3 = vld [vmem:[%s1370_s5 + $0x78] sm:$0x1f]   ;;  %v771_v6 = vld [vmem:[%s1371_s1] sm:$0xff] }
  0x17   :  { %v1088_v4 = vld [vmem:[%s1369_s4 + $0x38] sm:$0xff]   ;;  %776 = vperm.xlu0 %1019, %v771_v6   ;;  %v773_v7 = vld [vmem:[%s1371_s1 + $0x10] sm:$0xf]  ;;  %v772_v8 = vld [vmem:[%s1371_s1 + $0x8] sm:$0xff] }
  0x18   :  { %913 = vmatpush3.bf16.msra.mxu0 %v1043_v23  ;;  %v1089_v5 = vld [vmem:[%s1370_s5 + $0x38] sm:$0xff]   ;;  %786 = vperm.xlu1 %1020, %v773_v7  }
  0x19   :  { %941 = vmatpush3.bf16.msra.mxu1 %v1044_v24  ;;  %914 = vmatprep.subr.bf16.mxu0 %v1045_v25 }
  0x1a   :  { %942 = vmatprep.subr.bf16.mxu1 %v1046_v26 }
  0x1b   :  { %781 = vperm.xlu0 %1019, %v772_v8  }
  0x1c   :  { %915 = vmatpush3.bf16.msra.mxu0 %v1047_v27 }
  0x1d   :  { %943 = vmatpush3.bf16.msra.mxu1 %v1048_v28  ;;  %1014 = vmatprep.subr.msk.bf16.mxu0 %vm176_vm0, %v1049_v29 }
  0x1e   :  { %1015 = vmatprep.subr.msk.bf16.mxu1 %vm176_vm0, %v1050_v30 }
  0x20   :  { %917 = vmatpush3.bf16.msra.mxu0 %v1051_v31 }
  0x21   :  { %945 = vmatpush3.bf16.msra.mxu1 %v1052_v32  ;;  %958 = vmatprep.subr.bf16.mxu0 %v1056_v35 }
  0x22   :  { %986 = vmatprep.subr.bf16.mxu1 %v1057_v36 }
  0x23   :  { %213 = vmatmul.mubr.bf16.vlgmr.msra.gmra.mrb[0].mxu0 %v1232_v34 }
  0x24   :  { %391 = vmatmul.mubr.bf16.vlgmr.msra.gmra.mrb[0].mxu1 %v1232_v34  ;;  %959 = vmatpush3.bf16.msra.mxu0 %v1058_v37 }
  0x25   :  { %987 = vmatpush3.bf16.msra.mxu1 %v1059_v38  ;;  %960 = vmatprep.subr.bf16.mxu0 %v1060_v39 }
  0x26   :  { %988 = vmatprep.subr.bf16.mxu1 %v1061_v40  ;;  %836 = vmatprep.mubr.msk.bf16.mxu0 %vm169_vm1, %v818_v56 }
  0x27   :  { %854 = vmatprep.mubr.msk.bf16.mxu1 %vm169_vm1, %v818_v56 }
  0x28   :  { %961 = vmatpush3.bf16.msra.mxu0 %v1062_v41 }
  0x29   :  { %989 = vmatpush3.bf16.msra.mxu1 %v1063_v42  ;;  %962 = vmatprep.subr.bf16.mxu0 %v1064_v43 }
  0x2a   :  { %990 = vmatprep.subr.bf16.mxu1 %v1065_v44 }
  0x2b   :  { %221 = vmatmul.mubr.bf16.gmra.mrb[4].mxu0 %v817_v58 }
  0x2c   :  { %963 = vmatpush3.bf16.msra.mxu0 %v1066_v45  ;;  %399 = vmatmul.mubr.bf16.gmra.mrb[4].mxu1 %v817_v58 }
  0x2d   :  { %991 = vmatpush3.bf16.msra.mxu1 %v1067_v46  ;;  %964 = vmatprep.subr.bf16.mxu0 %v1068_v47 }
  0x2e   :  { %992 = vmatprep.subr.bf16.mxu1 %v1069_v48  ;;  %871 = vmatprep.mubr.msk.bf16.mxu0 %vm169_vm1, %v1227_v33 }
  0x2f   :  { %889 = vmatprep.mubr.msk.bf16.mxu1 %vm169_vm1, %v1227_v33 }
  0x30   :  { %965 = vmatpush3.bf16.msra.mxu0 %v1070_v49 }
  0x31   :  { %993 = vmatpush3.bf16.msra.mxu1 %v1071_v50  ;;  %966 = vmatprep.subr.bf16.mxu0 %v1072_v51 }
  0x32   :  { %994 = vmatprep.subr.bf16.mxu1 %v1073_v52 }
  0x34   :  { %967 = vmatpush3.bf16.msra.mxu0 %v1074_v53 }
  0x35   :  { %995 = vmatpush3.bf16.msra.mxu1 %v1075_v54  ;;  %968 = vmatprep.subr.bf16.mxu0 %v1077_v57 }
  0x36   :  { %996 = vmatprep.subr.bf16.mxu1 %v1078_v59 }
  0x38   :  { %969 = vmatpush3.bf16.msra.mxu0 %v1080_v60 }
  0x39   :  { %997 = vmatpush3.bf16.msra.mxu1 %v1081_v61  ;;  %970 = vmatprep.subr.bf16.mxu0 %v1082_v62 }
  0x3a   :  { %998 = vmatprep.subr.bf16.mxu1 %v1083_v63 }
  0x3c   :  { %971 = vmatpush3.bf16.msra.mxu0 %v1084_v0 }
  0x3d   :  { %999 = vmatpush3.bf16.msra.mxu1 %v1085_v1  ;;  %1016 = vmatprep.subr.msk.bf16.mxu0 %vm176_vm0, %v1086_v2 }
  0x3e   :  { %1017 = vmatprep.subr.msk.bf16.mxu1 %vm176_vm0, %v1087_v3 }
  0x40   :  { %973 = vmatpush3.bf16.msra.mxu0 %v1088_v4 }
  0x41   :  { %1001 = vmatpush3.bf16.msra.mxu1 %v1089_v5 }
  0x43   :  { %569 = vmatmul.mubr.bf16.vlgmr.msra.gmra.mrb[8].mxu0 %v1232_v34 }
  0x44   :  { %747 = vmatmul.mubr.bf16.vlgmr.msra.gmra.mrb[8].mxu1 %v1232_v34  ;;  %872 = vmatprep.mubr.msk.bf16.mxu0 %vm169_vm1, %v818_v56 }
  0x45   :  { %890 = vmatprep.mubr.msk.bf16.mxu1 %vm169_vm1, %v818_v56 }
  0x4b   :  { %577 = vmatmul.mubr.bf16.gmra.mrb[12].mxu0 %v817_v58 }
  0x4c   :  { %755 = vmatmul.mubr.bf16.gmra.mrb[12].mxu1 %v817_v58 }
  0x96   :  { %v777_v34 = vpop.permute.xlu0 %776 }
  0x97   :  { %v787_v3 = vpop.permute.xlu1 %786 }
  0x9a   :  { %v782_v50 = vpop.permute.xlu0 %781 }
  0xf6   :  { %v918_v9 = vpop.f32.mrb[0].mxu0 }
  0xf7   :  { %v946_v10 = vpop.f32.mrb[0].mxu1  ;;  %v919_v11 = vpop.f32.mrb[1].mxu0 }
  0xf8   :  { %v920_v12 = vadd.f32 %v919_v11, %v918_v9  ;;  %v947_v13 = vpop.f32.mrb[1].mxu1  ;;  %v921_v14 = vpop.f32.mrb[2].mxu0 }
  0xf9   :  { %v948_v15 = vadd.f32 %v947_v13, %v946_v10  ;;  %v949_v16 = vpop.f32.mrb[2].mxu1  ;;  %v922_v17 = vpop.f32.mrb[3].mxu0 }
  0xfa   :  { %v923_v18 = vadd.f32 %v922_v17, %v921_v14  ;;  %v950_v19 = vpop.f32.mrb[3].mxu1 }
  0xfb   :  { %v762_v20 = vmax.f32 %v920_v12, %v948_v15  ;;  %v951_v21 = vadd.f32 %v950_v19, %v949_v16 }
  0xfd   :  { %v763_v22 = vmax.f32 %v923_v18, %v951_v21 }
  0xfe   :  { %v924_v23 = vpop.f32.mrb[4].mxu0 }
  0xff   :  { %v952_v24 = vpop.f32.mrb[4].mxu1  ;;  %v925_v25 = vpop.f32.mrb[5].mxu0 }
 0x100   :  { %v953_v26 = vpop.f32.mrb[5].mxu1  ;;  %v926_v27 = vadd.f32 %v925_v25, %v924_v23  ;;  %v927_v29 = vpop.f32.mrb[6].mxu0 }
 0x101   :  { %v954_v28 = vadd.f32 %v953_v26, %v952_v24  ;;  %v955_v30 = vpop.f32.mrb[6].mxu1  ;;  %v928_v31 = vpop.f32.mrb[7].mxu0 }
 0x102   :  { %v956_v32 = vpop.f32.mrb[7].mxu1 }
 0x103   :  { %v764_v33 = vmax.f32 %v926_v27, %v954_v28 }
 0x116   :  { %v974_v35 = vpop.f32.mrb[8].mxu0 }
 0x117   :  { %v1002_v36 = vpop.f32.mrb[8].mxu1  ;;  %v975_v37 = vpop.f32.mrb[9].mxu0 }
 0x118   :  { %v1003_v38 = vpop.f32.mrb[9].mxu1  ;;  %v976_v39 = vadd.f32 %v975_v37, %v974_v35  ;;  %v977_v41 = vpop.f32.mrb[10].mxu0 }
 0x119   :  { %v1004_v40 = vadd.f32 %v1003_v38, %v1002_v36  ;;  %v1005_v42 = vpop.f32.mrb[10].mxu1  ;;  %v978_v43 = vpop.f32.mrb[11].mxu0 }
 0x11a   :  { %v1006_v44 = vpop.f32.mrb[11].mxu1  ;;  %v979_v46 = vadd.f32 %v978_v43, %v977_v41 }
 0x11b   :  { %v765_v45 = vmax.f32 %v976_v39, %v1004_v40  ;;  %v1007_v47 = vadd.f32 %v1006_v44, %v1005_v42 }
 0x11d   :  { %v766_v48 = vmax.f32 %v979_v46, %v1007_v47  ;;  %v768_v49 = vmax.f32 %v762_v20, %v765_v45 }
 0x11e   :  { %v980_v52 = vpop.f32.mrb[12].mxu0 }
 0x11f   :  { %v789_v51 = vadd.f32 %v777_v34, %v768_v49  ;;  %v1008_v53 = vpop.f32.mrb[12].mxu1  ;;  %v769_v54 = vmax.f32 %v763_v22, %v766_v48  ;;  %v981_v55 = vpop.f32.mrb[13].mxu0 }
 0x120   :  { %v1009_v56 = vpop.f32.mrb[13].mxu1  ;;  %v982_v58 = vadd.f32 %v981_v55, %v980_v52  ;;  %v983_v60 = vpop.f32.mrb[14].mxu0 }
 0x121   :  { %v790_v57 = vadd.f32 %v782_v50, %v769_v54  ;;  %v1010_v59 = vadd.f32 %v1009_v56, %v1008_v53  ;;  %v1011_v61 = vpop.f32.mrb[14].mxu1  ;;  %v984_v62 = vpop.f32.mrb[15].mxu0  ;;  %v792_v0 = vmax.f32 %v789_v51, 0.0 }
 0x122   :  { %v1012_v63 = vpop.f32.mrb[15].mxu1 }
 0x123   :  { %v793_v1 = vmax.f32 %v790_v57, 0.0  ;;  %v767_v2 = vmax.f32 %v982_v58, %v1010_v59 }
 0x125   :  { %v900_v4 = vpack.c.bf16 %v793_v1, %v792_v0  ;;  %v770_v5 = vmax.f32 %v764_v33, %v767_v2 }
 0x127   :  { %v791_v6 = vadd.f32 %v787_v3, %v770_v5  ;;  %901 = vst [vmem:[%s1372_s6] sm:$0xff] %v900_v4  }
 0x129   :  { %v794_v7 = vmax.f32 %v791_v6, 0.0 }
 0x12b   :  { %v896_v8 = vpack.c.bf16 %v794_v7, %v794_v7 }
 0x12d   :  { %810 = vst [vmem:[%s1372_s6 + $0x8] sm:$0x3] %v896_v8 }

// kernel: my_network_forward.5
= control target key start
LH: loop header
LB: loop body
LE: loop exit
PB: predicated region body
PF: predicated region fallthrough
CT: control target
= control target key end

     0   :  { %v554_v2 = vmov 0.0   ;;  %vm555_vm0 = vmmov 0   ;;  %v82_v15 = vlaneseq  ;;  %v556_v19 = vmov 1966171168   ;;  %s696_s0 = inlined_call_operand.vmem [shape: bf16[2,320], index: 0, kind: input, shape index: {}]   ;;  %s697_s1 = inlined_call_operand.vmem [shape: bf16[320,50], index: 1, kind: input, shape index: {}]   ;;  %s698_s2 = inlined_call_operand.vmem [shape: f32[1,50], index: 2, kind: input, shape index: {}]   ;;  %s699_s3 = inlined_call_operand.vmem [shape: bf16[50,10], index: 3, kind: input, shape index: {}]   ;;  %s700_s4 = inlined_call_operand.vmem [shape: f32[1,10], index: 4, kind: input, shape index: {}]   ;;  %s701_s5 = inlined_call_operand.hbm [shape: f32[2,10], index: 5, kind: output, shape index: {}]  }
   0x1   :  { %v502_v0 = vld [vmem:[%s697_s1 + $0x40] sm:$0xff]   ;;  %474 = vmatprep.subr.bf16.mxu1 %v554_v2  ;;  %v504_v3 = vld [vmem:[%s697_s1 + $0x48] sm:$0xff]   ;;  %482 = vmatprep.mubr.msk.bf16.mxu1 %vm555_vm0, %v554_v2  ;;  %v506_v5 = vld [vmem:[%s697_s1 + $0x50] sm:$0xff]   ;;  %v80_v20 = vunpack.c.l.s4 %v556_v19 }
   0x2   :  { %v503_v1 = vld [vmem:[%s697_s1] sm:$0xff]   ;;  %442 = vmatprep.subr.bf16.mxu0 %v502_v0  ;;  %v505_v4 = vld [vmem:[%s697_s1 + $0x8] sm:$0xff]   ;;  %v507_v6 = vld [vmem:[%s697_s1 + $0x10] sm:$0xff]   ;;  %v83_v21 = vshrl.u32 %v82_v15, 7 }
   0x3   :  { %443 = vmatpush3.bf16.msra.mxu0 %v503_v1  ;;  %v508_v7 = vld [vmem:[%s697_s1 + $0x58] sm:$0xff]   ;;  %v512_v8 = vld [vmem:[%s697_s1 + $0x80] sm:$0xff]   ;;  %v515_v11 = vld [vmem:[%s697_s1 + $0x88] sm:$0xff]   ;;  %v81_v25 = vunpack.c.0.s8 %v80_v20 }
   0x4   :  { %444 = vmatprep.subr.bf16.mxu0 %v504_v3  ;;  %v509_v9 = vld [vmem:[%s697_s1 + $0x18] sm:$0xff]   ;;  %v510_v10 = vld [vmem:[%s697_s1 + $0x60] sm:$0xff]   ;;  %475 = vmatpush3.bf16.msra.mxu1 %v512_v8  ;;  %v513_v13 = vld [vmem:[%s697_s1 + $0x68] sm:$0xff]  }
   0x5   :  { %476 = vmatprep.subr.bf16.mxu1 %v554_v2  ;;  %v511_v12 = vld [vmem:[%s697_s1 + $0x20] sm:$0xff]   ;;  %v518_v14 = vld [vmem:[%s697_s1 + $0x90] sm:$0xff]   ;;  %v514_v16 = vld [vmem:[%s697_s1 + $0x28] sm:$0xff]  }
   0x6   :  { %v516_v17 = vld [vmem:[%s697_s1 + $0x70] sm:$0xff]   ;;  %v414_v18 = vld.sshfl [vmem:[%s696_s0] sm:$0x13 pattern:$0x75316420]  ;;  %v521_v22 = vld [vmem:[%s697_s1 + $0x98] sm:$0xff]  }
   0x7   :  { %445 = vmatpush3.bf16.msra.mxu0 %v505_v4  ;;  %v517_v23 = vld [vmem:[%s697_s1 + $0x30] sm:$0xff]   ;;  %v78_v24 = vcombine.high %v414_v18, %v414_v18 }
   0x8   :  { %446 = vmatprep.subr.bf16.mxu0 %v506_v5  ;;  %477 = vmatpush3.bf16.msra.mxu1 %v515_v11 }
   0x9   :  { %478 = vmatprep.subr.bf16.mxu1 %v554_v2 }
   0xb   :  { %447 = vmatpush3.bf16.msra.mxu0 %v507_v6 }
   0xc   :  { %448 = vmatprep.subr.bf16.mxu0 %v508_v7  ;;  %479 = vmatpush3.bf16.msra.mxu1 %v518_v14 }
   0xd   :  { %480 = vmatprep.subr.bf16.mxu1 %v554_v2 }
   0xf   :  { %449 = vmatpush3.bf16.msra.mxu0 %v509_v9 }
  0x10   :  { %450 = vmatprep.subr.bf16.mxu0 %v510_v10 }
  0x13   :  { %451 = vmatpush3.bf16.msra.mxu0 %v511_v12 }
  0x14   :  { %452 = vmatprep.subr.bf16.mxu0 %v513_v13 }
  0x17   :  { %453 = vmatpush3.bf16.msra.mxu0 %v514_v16 }
  0x18   :  { %10 = vsyncpa [#allocation3], 0  ;;  %454 = vmatprep.subr.bf16.mxu0 %v516_v17  ;;  %v519_v26 = vld [vmem:[%s697_s1 + $0x78] sm:$0xff]   ;;  %v84_v27 = vsub.s32 %v81_v25, %v83_v21  ;;  %481 = vmatpush3.bf16.msra.mxu1 %v521_v22  ;;  %vm216_vm1 = vcmask 523264   ;;  %v522_v31 = vld [vmem:[%s699_s3] sm:$0xff]   ;;  %vm341_vm2 = vcmask 1040384  }
  0x19   :  { %486 = vmatprep.subr.bf16.mxu1 %v554_v2  ;;  %v520_v30 = vld [vmem:[%s697_s1 + $0x38] sm:$0xff]   ;;  %v523_v33 = vld [vmem:[%s699_s3 + $0x8] sm:$0xff]   ;;  %v524_v34 = vld [vmem:[%s699_s3 + $0x10] sm:$0xff]   ;;  %vm337_vm3 = vcmask 408576   ;;  %vm385_vm4 = vcmask 74752  }
  0x1a   :  { %v92_v28 = vrot.slane %v78_v24, %v84_v27  ;;  %v85_v29 = vrot.slane %v414_v18, %v84_v27  ;;  %v525_v35 = vld [vmem:[%s699_s3 + $0x18] ss:$0 sps:$4 sm:$0x11]   ;;  %v413_v43 = vld [vmem:[%s698_s2] ss:$0 sm:$0xff]  ;;  %s557_s2 = smov [#allocation2]  }
  0x1b   :  { %455 = vmatpush3.bf16.msra.mxu0 %v517_v23  ;;  %v343_v36 = vsel %vm341_vm2, %v525_v35, 0  ;;  %v436_v51 = vld [vmem:[%s700_s4] ss:$0 sm:$0xff]  ;;  %s405_s4 = sshll.u32 %s557_s2, 4  ;;  %s406_s4 = int_to_ptr.vmem [resolvable:$true] %s405_s4 }
  0x1c   :  { %456 = vmatprep.subr.bf16.mxu0 %v519_v26  ;;  %252 = vmatprep.mubr.bf16.mxu0 %v92_v28  ;;  %v93_v32 = vcombine.high %v85_v29, %v85_v29  ;;  %s530_s19 = scalar_lea.vmem %s406_s4, 32  ;;  %p535_p1 = scmp.lt.s32.totalorder %s406_s4, %s406_s4 }
  0x1d   :  { %p531_p0 = scmp.ne.s32.totalorder %s406_s4, %s530_s19  ;;  %p536_p2 = scmp.lt.s32.totalorder %s530_s19, %s530_s19 }
  0x1e   :  { %483 = vmatmul.mubr.msk.bf16.vlgmr.msra.gmra.mrb[0].mxu1 %vm216_vm1, %v93_v32 }
  0x1f   :  { %457 = vmatpush3.bf16.msra.mxu0 %v520_v30  ;;  %487 = vmatpush3.bf16.msra.mxu1 %v522_v31  ;;  %p537_p3 = por %p536_p2, %p535_p1 }
  0x20   :  { %488 = vmatprep.subr.bf16.mxu1 %v554_v2  ;;  %494 = vmatprep.mubr.msk.bf16.mxu1 %vm555_vm0, %v554_v2 }
  0x21   :  { %p538_p4 = pnand %p537_p3, %p531_p0 }
  0x22   :  { %253 = vmatmul.mubr.bf16.vlgmr.msra.gmra.mrb[0].mxu0 %v85_v29 }
  0x23   :  { %489 = vmatpush3.bf16.msra.mxu1 %v523_v33 }
  0x24   :  { %490 = vmatprep.subr.bf16.mxu1 %v554_v2 }
  0x27   :  { %491 = vmatpush3.bf16.msra.mxu1 %v524_v34 }
  0x28   :  { %492 = vmatprep.subr.bf16.mxu1 %v554_v2 }
  0x2b   :  { %493 = vmatpush3.bf16.msra.mxu1 %v343_v36 }
  0xf1   :  { %v294_v37 = vpop.f32.mrb[0].mxu1 }
  0xf2   :  { %v484_v38 = vpop.f32.mrb[1].mxu1 }
  0xf3   :  { %v297_v39 = vpop.f32.mrb[2].mxu1 }
  0xf4   :  { %v485_v40 = vpop.f32.mrb[3].mxu1 }
  0xf5   :  { %v458_v41 = vpop.f32.mrb[0].mxu0 }
  0xf6   :  { %v459_v42 = vpop.f32.mrb[1].mxu0 }
  0xf7   :  { %v460_v44 = vadd.f32 %v459_v42, %v458_v41  ;;  %v461_v45 = vpop.f32.mrb[2].mxu0 }
  0xf8   :  { %v462_v46 = vpop.f32.mrb[3].mxu0 }
  0xf9   :  { %v255_v47 = vadd.f32 %v460_v44, %v413_v43 }
  0xfb   :  { %v295_v48 = vadd.f32 %v294_v37, %v255_v47 }
  0xfd   :  { %v300_v49 = vmax.f32 %v295_v48, 0.0 }
  0xff   :  { %v301_v50 = vpack.c.bf16 %v300_v49, %v300_v49 }
 0x101   :  { %495 = vmatmul.mubr.msk.bf16.vlgmr.msra.gmra.mrb[4].mxu1 %vm337_vm3, %v301_v50 }
 0x1d4   :  { %v379_v52 = vpop.f32.mrb[4].mxu1 }
 0x1d5   :  { %v380_v53 = vadd.f32 %v436_v51, %v379_v52  ;;  %v496_v54 = vpop.f32.mrb[5].mxu1 }
 0x1d6   :  { %v382_v55 = vpop.f32.mrb[6].mxu1 }
 0x1d7   :  { %v497_v56 = vpop.f32.mrb[7].mxu1  ;;  %v386_v57 = vsel %vm385_vm4, %v380_v53, -inf }
 0x1d8   :  { %387 = vmax.xlane.f32.xlu0 %v386_v57 }
 0x265   :  { %v388_v58 = vpop.xlane.xlu0 %387 }
 0x266   :  { %v389_v59 = vsub.f32 %v380_v53, %v388_v58 }
 0x268   :  { %v390_v60 = vmul.f32 1.442695, %v389_v59 }
 0x26a   :  { %526 = vpow2.f32 %v390_v60 }
 0x274   :  { %v527_v61 = vpop.eup %526 }
 0x275   :  { %v392_v62 = vsel %vm385_vm4, %v527_v61, 0.0 }
 0x276   :  { %393 = vadd.xlane.f32.xlu0 %v392_v62 }
 0x303   :  { %v394_v63 = vpop.xlane.xlu0 %393 }
 0x304   :  { %528 = vlog2.f32 %v394_v63 }
 0x30e   :  { %v529_v0 = vpop.eup %528 }
 0x30f   :  { %v396_v1 = vmul.f32 0.6931472, %v529_v0 }
 0x311   :  { %v397_v2 = vsub.f32 %v389_v59, %v396_v1 }
 0x313   :  { %398 = vst.msk [vmem:[#allocation2] sm:$0x3] %vm385_vm4, %v397_v2 }
 0x314   :  { %541 = shalt.err (!%p538_p4)
}
 0x315   :  { %s542_s22 = scalar_lea.hbm %s701_s5, 32 }
 0x316   :  { %p543_p5 = scmp.ne.s32.totalorder %s701_s5, %s542_s22  ;;  %p546_p6 = scmp.lt.u32.totalorder %s542_s22, %s701_s5 }
 0x318   :  { %p548_p7 = pnand %p546_p6, %p543_p5 }
 0x31a   :  { %551 = shalt.err (!%p548_p7)
}
 0x31b   :  { %408 = dma.vmem_to_hbm [thread:$0]  %s406_s4, 32, %s701_s5, [#allocation3]  }
 0x31c   :  { %552 = dma.done.wait [#allocation3], 32  }
 0x31d   :  { %553 = vsyncadd [#allocation3], 4294967264 }
 0x31e   :  { %412 = vsyncpa [#allocation3], 1 }

</bundles_post_ra>
